<compile_context>
chip_gen: v6e
topology: v6e:2x2x1
jax: 0.10.0
libtpu: 0.0.40
codegen_flags: <defaults>
</compile_context>

<pallas_src>
import jax
import jax.numpy as jnp
from jax.experimental import pallas as pl
from jax.experimental.pallas import tpu as pltpu

_LANE = 128      # TPU lane width (last dim of every block)
_SUBLANE = 8     # f32 sublane granularity (second-to-last dim)


def _round_up(x, m):
    return ((x + m - 1) // m) * m


def _pick_tile(total_p, max_tile, unit):
    """Largest multiple of `unit` that divides `total_p` and is <= max_tile."""
    t = min((max(max_tile, unit) // unit) * unit, total_p)
    while total_p % t != 0:
        t -= unit
    return t


def _vmem_capacity_bytes():
    try:
        return int(pltpu.get_tpu_info().vmem_capacity_bytes)
    except Exception:
        return 64 * 1024 * 1024   # conservative fallback (v7x per-TC VMEM)


def prepare_mlp_params(w1, b1, w2, b2, *, mxu_dtype=None):
    """Pad (and optionally cast) the weights ONCE, outside the per-call path.

    w1: [D_in, H], b1: [H], w2: [H, D_out], b2: [D_out]
    mxu_dtype: e.g. jnp.bfloat16 to feed the MXU bf16 operands (f32 accumulate).
    """
    D_in, H = w1.shape
    D_out = w2.shape[1]
    d_in_p = _round_up(D_in, _LANE)
    h_p = _round_up(H, _LANE)
    d_out_p = _round_up(D_out, _LANE)
    wdt = mxu_dtype if mxu_dtype is not None else w1.dtype

    def _pad2(a, rows, cols, dt):
        a = a.astype(dt)
        if a.shape == (rows, cols):
            return a
        return jnp.zeros((rows, cols), dt).at[:a.shape[0], :a.shape[1]].set(a)

    w1p = _pad2(w1, d_in_p, h_p, wdt)
    w2p = _pad2(w2, h_p, d_out_p, wdt)
    # Biases stay f32: they are added in the f32 epilogue, never fed to the MXU.
    b1p = _pad2(jnp.reshape(b1, (1, -1)), 1, h_p, jnp.float32)
    b2p = _pad2(jnp.reshape(b2, (1, -1)), 1, d_out_p, jnp.float32)
    dims = dict(D_in=D_in, H=H, D_out=D_out,
                d_in_p=d_in_p, h_p=h_p, d_out_p=d_out_p)
    return (w1p, b1p, w2p, b2p), dims


def mlp_kernel(x_ref, w1_ref, b1_ref, w2_ref, b2_ref, o_ref, h_ref):
    # fc1 (MXU, f32 accumulate) + bias + ReLU: computed ONCE per batch tile
    # (first output-tile step) and cached in VMEM scratch across the j axis.
    @pl.when(pl.program_id(1) == 0)
    def _():
        h = jnp.dot(x_ref[...], w1_ref[...], preferred_element_type=jnp.float32)
        h_ref[...] = jnp.maximum(h + b1_ref[...], 0.0)

    # fc2: cast the cached f32 h to the weight dtype (no-op for f32 weights,
    # bf16 for the bf16 MXU path), accumulate in f32, add bias in f32.
    h = h_ref[...].astype(w2_ref.dtype)
    y = jnp.dot(h, w2_ref[...], preferred_element_type=jnp.float32)
    o_ref[...] = (y + b2_ref[...]).astype(o_ref.dtype)


def mlp_forward(x, params, dims, *, batch_tile=256, out_tile=512, out_dtype=None):
    """y = relu(x @ W1 + b1) @ W2 + b2, with pre-padded params from prepare_mlp_params."""
    w1p, b1p, w2p, b2p = params
    B, D_in = x.shape
    assert D_in == dims["D_in"], "x feature dim does not match prepared params"
    D_out = dims["D_out"]
    d_in_p, h_p, d_out_p = dims["d_in_p"], dims["h_p"], dims["d_out_p"]
    out_dtype = out_dtype if out_dtype is not None else x.dtype

    # --- per-call activation padding only (weights already padded/cast) ---
    b_p = _round_up(B, _SUBLANE)
    xdt = w1p.dtype  # feed the MXU the same dtype as the weights (bf16 or f32)
    if (B, D_in) == (b_p, d_in_p) and x.dtype == xdt:
        xp = x
    else:
        xp = jnp.zeros((b_p, d_in_p), xdt).at[:B, :D_in].set(x.astype(xdt))

    # --- tile selection under an explicit VMEM budget ---
    xb = jnp.dtype(xdt).itemsize
    wb = jnp.dtype(w1p.dtype).itemsize
    ob = jnp.dtype(out_dtype).itemsize
    capacity = _vmem_capacity_bytes()
    budget = int(capacity * 0.75)

    def working_set(bt, nt):
        dbl = 2  # double-buffered pipeline blocks
        ws = dbl * (bt * d_in_p * xb          # x block
                    + d_in_p * h_p * wb       # W1 (constant-index, resident)
                    + h_p * 4                 # b1
                    + h_p * nt * wb           # W2 block
                    + nt * 4                  # b2
                    + bt * nt * ob)           # output block
        ws += bt * h_p * 4                    # h scratch (f32, single copy)
        return ws

    cap_bt = max(_SUBLANE, (min(batch_tile, b_p) // _SUBLANE) * _SUBLANE)
    cap_nt = max(_LANE, (min(out_tile, d_out_p) // _LANE) * _LANE)
    while True:
        bt = _pick_tile(b_p, cap_bt, _SUBLANE)
        nt = _pick_tile(d_out_p, cap_nt, _LANE)
        if working_set(bt, nt) <= budget or (cap_bt <= _SUBLANE and cap_nt <= _LANE):
            break
        if cap_nt > _LANE:
            cap_nt = max(_LANE, cap_nt // 2)
        else:
            cap_bt = max(_SUBLANE, cap_bt // 2)

    vmem_limit = int(min(max(working_set(bt, nt) + (4 << 20), 32 << 20), capacity))

    grid = (b_p // bt, d_out_p // nt)

    # Advisory cost model: fc1 is computed once per batch tile (cached across j).
    flops = 2 * b_p * d_in_p * h_p + 2 * b_p * h_p * d_out_p
    bytes_accessed = (xp.size * xb
                      + w1p.size * wb + b1p.size * 4
                      + grid[0] * (w2p.size * wb + b2p.size * 4)  # W2 re-streamed per batch tile
                      + b_p * d_out_p * ob)

    out_p = pl.pallas_call(
        mlp_kernel,
        out_shape=jax.ShapeDtypeStruct((b_p, d_out_p), out_dtype),
        grid_spec=pltpu.PrefetchScalarGridSpec(
            num_scalar_prefetch=0,
            grid=grid,
            in_specs=[
                # activations: tiled over the batch axis, constant over j
                pl.BlockSpec((bt, d_in_p), lambda i, j: (i, 0)),
                # fc1 weights/bias: constant block (resident across the grid)
                pl.BlockSpec((d_in_p, h_p), lambda i, j: (0, 0)),
                pl.BlockSpec((1, h_p), lambda i, j: (0, 0)),
                # fc2 weights/bias: tiled along the output (N) dimension
                pl.BlockSpec((h_p, nt), lambda i, j: (0, j)),
                pl.BlockSpec((1, nt), lambda i, j: (0, j)),
            ],
            out_specs=pl.BlockSpec((bt, nt), lambda i, j: (i, j)),
            # h cache: carries relu(x@W1+b1) across the j axis for one batch tile.
            scratch_shapes=[pltpu.VMEM((bt, h_p), jnp.float32)],
        ),
        compiler_params=pltpu.CompilerParams(
            # batch axis independent -> megacore sharding on v7x;
            # j axis carries the h scratch -> must be "arbitrary".
            dimension_semantics=("parallel", "arbitrary"),
            vmem_limit_bytes=vmem_limit,
        ),
        cost_estimate=pl.CostEstimate(
            flops=int(flops), transcendentals=0, bytes_accessed=int(bytes_accessed)),
    )(xp, w1p, b1p, w2p, b2p)

    return out_p[:B, :D_out]


def reference_mlp(x, w1, b1, w2, b2):
    h = jnp.maximum(x @ w1 + b1, 0.0)
    return h @ w2 + b2


if __name__ == "__main__":
    key = jax.random.PRNGKey(0)
    kx, kw1, kb1, kw2, kb2, kx2, kw2b, kb2b = jax.random.split(key, 8)

    # Shapes consistent with the module: mlp(input_dim=32, hidden_dim=64, output_dim=16)
    B, D_in, H, D_out = 8, 32, 64, 16
    lim1 = 1.0 / (D_in ** 0.5)
    lim2 = 1.0 / (H ** 0.5)

    x = jax.random.normal(kx, (B, D_in), dtype=jnp.float32)
    w1 = jax.random.uniform(kw1, (D_in, H), minval=-lim1, maxval=lim1, dtype=jnp.float32)
    b1 = jax.random.uniform(kb1, (H,), minval=-lim1, maxval=lim1, dtype=jnp.float32)
    w2 = jax.random.uniform(kw2, (H, D_out), minval=-lim2, maxval=lim2, dtype=jnp.float32)
    b2 = jax.random.uniform(kb2, (D_out,), minval=-lim2, maxval=lim2, dtype=jnp.float32)

    # Test 1: f32 path, parity with the fp32 PyTorch-style reference.
    params, dims = prepare_mlp_params(w1, b1, w2, b2)
    out = jax.block_until_ready(mlp_forward(x, params, dims))
    ref = reference_mlp(x, w1, b1, w2, b2)
    assert out.shape == (B, D_out)
    assert jnp.allclose(out, ref, atol=1e-5, rtol=1e-5), "mismatch vs reference (test 1)"

    # Test 2: exercise batch tiling, fc2 N-tiling (h cache reused across j),
    # and un-padding slices.
    B2, D2_out = 20, 200
    x2 = jax.random.normal(kx2, (B2, D_in), dtype=jnp.float32)
    w2b = jax.random.uniform(kw2b, (H, D2_out), minval=-lim2, maxval=lim2, dtype=jnp.float32)
    b2b = jax.random.uniform(kb2b, (D2_out,), minval=-lim2, maxval=lim2, dtype=jnp.float32)
    params2, dims2 = prepare_mlp_params(w1, b1, w2b, b2b)
    out2 = jax.block_until_ready(
        mlp_forward(x2, params2, dims2, batch_tile=8, out_tile=128))
    ref2 = reference_mlp(x2, w1, b1, w2b, b2b)
    assert out2.shape == (B2, D2_out)
    assert jnp.allclose(out2, ref2, atol=1e-5, rtol=1e-5), "mismatch vs reference (test 2)"

    # Test 3: bf16 MXU operands with f32 accumulation (loose tolerance vs fp32 ref).
    params_bf, dims_bf = prepare_mlp_params(w1, b1, w2, b2, mxu_dtype=jnp.bfloat16)
    out_bf = jax.block_until_ready(
        mlp_forward(x, params_bf, dims_bf, out_dtype=jnp.float32))
    assert out_bf.shape == (B, D_out)
    assert jnp.allclose(out_bf, ref, atol=1e-1, rtol=1e-1), "mismatch vs reference (test 3, bf16)"

    print("KERNEL_OK")
</pallas_src>

<mosaic_0001>
module attributes {stable_mosaic.version = 11 : i64} {
  func.func @mlp_kernel(%arg0: i32, %arg1: i32, %arg2: memref<8x128xf32, #tpu.memory_space<vmem>>, %arg3: memref<128x128xf32, #tpu.memory_space<vmem>>, %arg4: memref<1x128xf32, #tpu.memory_space<vmem>>, %arg5: memref<128x128xf32, #tpu.memory_space<vmem>>, %arg6: memref<1x128xf32, #tpu.memory_space<vmem>>, %arg7: memref<8x128xf32, #tpu.memory_space<vmem>>, %arg8: memref<8x128xf32, #tpu.memory_space<vmem>>) attributes {dimension_semantics = [#tpu.dimension_semantics<parallel>, #tpu.dimension_semantics<arbitrary>], iteration_bounds = array<i64: 1, 1>, scalar_prefetch = 0 : i64, scratch_operands = 1 : i64, tpu.core_type = #tpu.core_type<tc>, window_params = [{transform_indices = @transform_0, window_bounds = array<i64: 8, 128>}, {pipeline_mode = #tpu.pipeline_mode<synchronous>, transform_indices = @transform_1, window_bounds = array<i64: 128, 128>}, {pipeline_mode = #tpu.pipeline_mode<synchronous>, transform_indices = @transform_2, window_bounds = array<i64: 1, 128>}, {transform_indices = @transform_3, window_bounds = array<i64: 128, 128>}, {transform_indices = @transform_4, window_bounds = array<i64: 1, 128>}, {transform_indices = @transform_5, window_bounds = array<i64: 8, 128>}]} {
    %c0_i32 = arith.constant 0 : i32
    %0 = arith.cmpi eq, %arg1, %c0_i32 : i32
    %1 = arith.extui %0 : i1 to i32
    %c0_i32_0 = arith.constant 0 : i32
    %2 = arith.cmpi ne, %1, %c0_i32_0 : i32
    scf.if %2 {
      %c0_8 = arith.constant 0 : index
      %c0_9 = arith.constant 0 : index
      %10 = vector.load %arg2[%c0_8, %c0_9] : memref<8x128xf32, #tpu.memory_space<vmem>>, vector<8x128xf32>
      %c0_10 = arith.constant 0 : index
      %c0_11 = arith.constant 0 : index
      %11 = vector.load %arg3[%c0_10, %c0_11] : memref<128x128xf32, #tpu.memory_space<vmem>>, vector<128x128xf32>
      %cst_12 = arith.constant dense<0.000000e+00> : vector<8x128xf32>
      %12 = tpu.matmul %10, %11, %cst_12 {dimension_numbers = #tpu.dot_dimension_numbers<[1], [0], [0], [1], [0, 0, 1, 1], [], []>} : vector<8x128xf32>, vector<128x128xf32>, vector<8x128xf32> -> vector<8x128xf32>
      %c0_13 = arith.constant 0 : index
      %c0_14 = arith.constant 0 : index
      %13 = vector.load %arg4[%c0_13, %c0_14] : memref<1x128xf32, #tpu.memory_space<vmem>>, vector<1x128xf32>
      %14 = vector.broadcast %13 : vector<1x128xf32> to vector<8x128xf32>
      %15 = arith.addf %12, %14 : vector<8x128xf32>
      %cst_15 = arith.constant 0.000000e+00 : f32
      %16 = vector.broadcast %cst_15 : f32 to vector<8x128xf32>
      %17 = arith.maximumf %15, %16 : vector<8x128xf32>
      %c0_16 = arith.constant 0 : index
      %c0_17 = arith.constant 0 : index
      %18 = vector.load %arg8[%c0_16, %c0_17] : memref<8x128xf32, #tpu.memory_space<vmem>>, vector<8x128xf32>
      tpu.vector_store %arg8[%c0_16, %c0_17], %17 {strides = array<i32>} : memref<8x128xf32, #tpu.memory_space<vmem>>, vector<8x128xf32>,
    } else {
    }
    %c0 = arith.constant 0 : index
    %c0_1 = arith.constant 0 : index
    %3 = vector.load %arg8[%c0, %c0_1] : memref<8x128xf32, #tpu.memory_space<vmem>>, vector<8x128xf32>
    %c0_2 = arith.constant 0 : index
    %c0_3 = arith.constant 0 : index
    %4 = vector.load %arg5[%c0_2, %c0_3] : memref<128x128xf32, #tpu.memory_space<vmem>>, vector<128x128xf32>
    %cst = arith.constant dense<0.000000e+00> : vector<8x128xf32>
    %5 = tpu.matmul %3, %4, %cst {dimension_numbers = #tpu.dot_dimension_numbers<[1], [0], [0], [1], [0, 0, 1, 1], [], []>} : vector<8x128xf32>, vector<128x128xf32>, vector<8x128xf32> -> vector<8x128xf32>
    %c0_4 = arith.constant 0 : index
    %c0_5 = arith.constant 0 : index
    %6 = vector.load %arg6[%c0_4, %c0_5] : memref<1x128xf32, #tpu.memory_space<vmem>>, vector<1x128xf32>
    %7 = vector.broadcast %6 : vector<1x128xf32> to vector<8x128xf32>
    %8 = arith.addf %5, %7 : vector<8x128xf32>
    %c0_6 = arith.constant 0 : index
    %c0_7 = arith.constant 0 : index
    %9 = vector.load %arg7[%c0_6, %c0_7] : memref<8x128xf32, #tpu.memory_space<vmem>>, vector<8x128xf32>
    tpu.vector_store %arg7[%c0_6, %c0_7], %8 {strides = array<i32>} : memref<8x128xf32, #tpu.memory_space<vmem>>, vector<8x128xf32>,
    return
  }
  func.func @transform_0(%arg0: i32, %arg1: i32) -> (i32, i32) {
    %c0_i32 = arith.constant 0 : i32
    %c0_i32_0 = arith.constant 0 : i32
    return %arg0, %c0_i32 : i32, i32
  }
  func.func @transform_1(%arg0: i32, %arg1: i32) -> (i32, i32) {
    %c0_i32 = arith.constant 0 : i32
    %c0_i32_0 = arith.constant 0 : i32
    %c0_i32_1 = arith.constant 0 : i32
    return %c0_i32, %c0_i32_0 : i32, i32
  }
  func.func @transform_2(%arg0: i32, %arg1: i32) -> (i32, i32) {
    %c0_i32 = arith.constant 0 : i32
    %c0_i32_0 = arith.constant 0 : i32
    %c0_i32_1 = arith.constant 0 : i32
    return %c0_i32, %c0_i32_0 : i32, i32
  }
  func.func @transform_3(%arg0: i32, %arg1: i32) -> (i32, i32) {
    %c0_i32 = arith.constant 0 : i32
    %c0_i32_0 = arith.constant 0 : i32
    return %c0_i32, %arg1 : i32, i32
  }
  func.func @transform_4(%arg0: i32, %arg1: i32) -> (i32, i32) {
    %c0_i32 = arith.constant 0 : i32
    %c0_i32_0 = arith.constant 0 : i32
    return %c0_i32, %arg1 : i32, i32
  }
  func.func @transform_5(%arg0: i32, %arg1: i32) -> (i32, i32) {
    %c0_i32 = arith.constant 0 : i32
    return %arg0, %arg1 : i32, i32
  }
}

</mosaic_0001>

<bundles_post_ra>
// kernel: tpu_custom_call.1
= control target key start
LH: loop header
LB: loop body
LE: loop exit
PB: predicated region body
PF: predicated region fallthrough
CT: control target
= control target key end

     0   :  { %10 = vsyncpa [#allocation4], 0  ;;  %s561_s0 = inlined_call_operand.hbm [shape: f32[8,128], index: 0, kind: input, shape index: {}]   ;;  %s562_s1 = inlined_call_operand.hbm [shape: f32[128,128], index: 1, kind: input, shape index: {}]   ;;  %s563_s2 = inlined_call_operand.vmem [shape: f32[1,128], index: 2, kind: input, shape index: {}]   ;;  %s564_s3 = inlined_call_operand.hbm [shape: f32[128,128], index: 3, kind: input, shape index: {}]   ;;  %s565_s4 = inlined_call_operand.vmem [shape: f32[1,128], index: 4, kind: input, shape index: {}]   ;;  %s566_s5 = inlined_call_operand.hbm [shape: f32[8,128], index: 5, kind: output, shape index: {}]  }
   0x1   :  { %11 = vsyncpa [#allocation7], 0 }
   0x2   :  { %12 = vsyncpa [#allocation5], 0  ;;  %s471_s18 = smov [#allocation6]  }
   0x3   :  { %s28_s19 = sshll.u32 %s471_s18, 4  ;;  %s29_s19 = int_to_ptr.vmem [resolvable:$true] %s28_s19 }
   0x4   :  { %s393_s20 = scalar_lea.vmem %s29_s19, 2048  ;;  %p398_p1 = scmp.lt.s32.totalorder %s29_s19, %s29_s19 }
   0x5   :  { %p394_p0 = scmp.ne.s32.totalorder %s29_s19, %s393_s20  ;;  %p399_p2 = scmp.lt.s32.totalorder %s393_s20, %s393_s20 }
   0x7   :  { %p400_p3 = por %p399_p2, %p398_p1 }
   0x9   :  { %p401_p4 = pnand %p400_p3, %p394_p0 }
   0xb   :  { %404 = shalt.err (!%p401_p4)
}
   0xc   :  { %s472_s21 = smov 128   ;;  %s473_s22 = smov 8  }
   0xd   :  { %34 = dma.hbm_to_vmem [thread:$0]  %s562_s1, 2048, %s29_s19, [#allocation7], %s472_s21, %s472_s21, %s473_s22  }
   0xe   :  { %s474_s25 = smov [#allocation3]   ;;  %s475_s27 = smov [#allocation8]  }
   0xf   :  { %s19_s26 = sshll.u32 %s474_s25, 4  ;;  %s42_s28 = sshll.u32 %s475_s27, 4  ;;  %s20_s26 = int_to_ptr.vmem [resolvable:$true] %s19_s26  ;;  %s43_s28 = int_to_ptr.vmem [resolvable:$true] %s42_s28 }
  0x10   :  { %s413_s29 = scalar_lea.vmem %s20_s26, 128  ;;  %p418_p6 = scmp.lt.s32.totalorder %s20_s26, %s20_s26 }
  0x11   :  { %p414_p5 = scmp.ne.s32.totalorder %s20_s26, %s413_s29  ;;  %p419_p7 = scmp.lt.s32.totalorder %s413_s29, %s413_s29 }
  0x13   :  { %p420_p8 = por %p419_p7, %p418_p6 }
  0x15   :  { %p421_p9 = pnand %p420_p8, %p414_p5 }
  0x17   :  { %424 = shalt.err (!%p421_p9)
}
  0x18   :  { %22 = dma.hbm_to_vmem [thread:$0]  %s561_s0, 128, %s20_s26, [#allocation4]  }
  0x19   :  { %s433_s7 = scalar_lea.vmem %s43_s28, 2048  ;;  %p438_p11 = scmp.lt.s32.totalorder %s43_s28, %s43_s28 }
  0x1a   :  { %p434_p10 = scmp.ne.s32.totalorder %s43_s28, %s433_s7  ;;  %p439_p12 = scmp.lt.s32.totalorder %s433_s7, %s433_s7 }
  0x1c   :  { %p440_p13 = por %p439_p12, %p438_p11 }
  0x1e   :  { %p441_p0 = pnand %p440_p13, %p434_p10 }
  0x20   :  { %444 = shalt.err (!%p441_p0)
}
  0x21   :  { %48 = dma.hbm_to_vmem [thread:$0]  %s564_s3, 2048, %s43_s28, [#allocation7], %s472_s21, %s472_s21, %s473_s22  }
  0x22   :  { %465 = dma.done.wait [#allocation4], 128  }
  0x23   :  { %466 = vsyncadd [#allocation4], 4294967168 }
  0x24   :  { %467 = dma.done.wait [#allocation7], 4096  }
  0x25   :  { %468 = vsyncadd [#allocation7], 4294963200  ;;  %v476_v0 = vmov 0.0   ;;  %vm477_vm0 = vmmov 0   ;;  %v80_v1 = vld [vmem:[#allocation6 + $0x78] sm:$0xff]  ;;  %v79_v2 = vld [vmem:[#allocation6 + $0x70] sm:$0xff] }
  0x26   :  { %307 = vmatprep.subr.mxu0 %v476_v0  ;;  %339 = vmatprep.mubr.msk.f32.mxu0 %vm477_vm0, %v476_v0  ;;  %v78_v3 = vld [vmem:[#allocation6 + $0x68] sm:$0xff]  ;;  %v77_v4 = vld [vmem:[#allocation6 + $0x60] sm:$0xff]  ;;  %v176_v5 = vld [vmem:[#allocation8 + $0x78] sm:$0xff]  ;;  %s478_s11 = smov [#allocation9]  }
  0x27   :  { %342 = vmatprep.subr.mxu1 %v476_v0  ;;  %374 = vmatprep.mubr.msk.f32.mxu1 %vm477_vm0, %v476_v0  ;;  %v76_v6 = vld [vmem:[#allocation6 + $0x58] sm:$0xff]  ;;  %v175_v7 = vld [vmem:[#allocation8 + $0x70] sm:$0xff]  ;;  %v174_v8 = vld [vmem:[#allocation8 + $0x68] sm:$0xff]  ;;  %s261_s12 = sshll.u32 %s478_s11, 4  ;;  %s262_s12 = int_to_ptr.vmem [resolvable:$true] %s261_s12 }
  0x28   :  { %308 = vmatpush3.msra.mxu0 %v80_v1  ;;  %343 = vmatpush3.msra.mxu1 %v176_v5  ;;  %v75_v9 = vld [vmem:[#allocation6 + $0x50] sm:$0xff]  ;;  %v173_v10 = vld [vmem:[#allocation8 + $0x60] sm:$0xff]  ;;  %v74_v11 = vld [vmem:[#allocation6 + $0x48] sm:$0xff]  ;;  %s445_s13 = scalar_lea.vmem %s262_s12, 128  ;;  %p450_p2 = scmp.lt.s32.totalorder %s262_s12, %s262_s12 }
  0x29   :  { %309 = vmatprep.subr.mxu0 %v476_v0  ;;  %344 = vmatprep.subr.mxu1 %v476_v0  ;;  %v172_v12 = vld [vmem:[#allocation8 + $0x58] sm:$0xff]  ;;  %v73_v13 = vld [vmem:[#allocation6 + $0x40] sm:$0xff]  ;;  %v171_v14 = vld [vmem:[#allocation8 + $0x50] sm:$0xff]  ;;  %p446_p1 = scmp.ne.s32.totalorder %s262_s12, %s445_s13  ;;  %p451_p3 = scmp.lt.s32.totalorder %s445_s13, %s445_s13 }
  0x2a   :  { %310 = vmatpush3.msra.mxu0 %v79_v2  ;;  %345 = vmatpush3.msra.mxu1 %v175_v7  ;;  %v72_v15 = vld [vmem:[#allocation6 + $0x38] sm:$0xff]  ;;  %v170_v16 = vld [vmem:[#allocation8 + $0x48] sm:$0xff]  ;;  %v71_v17 = vld [vmem:[#allocation6 + $0x30] sm:$0xff] }
  0x2b   :  { %311 = vmatprep.subr.mxu0 %v476_v0  ;;  %346 = vmatprep.subr.mxu1 %v476_v0  ;;  %v169_v18 = vld [vmem:[#allocation8 + $0x40] sm:$0xff]  ;;  %v70_v19 = vld [vmem:[#allocation6 + $0x28] sm:$0xff]  ;;  %v168_v20 = vld [vmem:[#allocation8 + $0x38] sm:$0xff]  ;;  %p452_p4 = por %p451_p3, %p450_p2 }
  0x2c   :  { %312 = vmatpush3.msra.mxu0 %v78_v3  ;;  %347 = vmatpush3.msra.mxu1 %v174_v8  ;;  %v69_v21 = vld [vmem:[#allocation6 + $0x20] sm:$0xff]  ;;  %v167_v22 = vld [vmem:[#allocation8 + $0x30] sm:$0xff]  ;;  %v68_v23 = vld [vmem:[#allocation6 + $0x18] sm:$0xff] }
  0x2d   :  { %313 = vmatprep.subr.mxu0 %v476_v0  ;;  %348 = vmatprep.subr.mxu1 %v476_v0  ;;  %v166_v24 = vld [vmem:[#allocation8 + $0x28] sm:$0xff]  ;;  %v67_v25 = vld [vmem:[#allocation6 + $0x10] sm:$0xff]  ;;  %v165_v26 = vld [vmem:[#allocation8 + $0x20] sm:$0xff]  ;;  %p453_p5 = pnand %p452_p4, %p446_p1 }
  0x2e   :  { %314 = vmatpush3.msra.mxu0 %v77_v4  ;;  %349 = vmatpush3.msra.mxu1 %v173_v10  ;;  %v66_v27 = vld [vmem:[#allocation6 + $0x8] sm:$0xff]  ;;  %v164_v28 = vld [vmem:[#allocation8 + $0x18] sm:$0xff]  ;;  %v65_v29 = vld [vmem:[#allocation6] sm:$0xff] }
  0x2f   :  { %315 = vmatprep.subr.mxu0 %v476_v0  ;;  %350 = vmatprep.subr.mxu1 %v476_v0  ;;  %v64_v30 = vld [vmem:[#allocation3] sm:$0xff]  ;;  %v163_v31 = vld [vmem:[#allocation8 + $0x10] sm:$0xff]  ;;  %v162_v32 = vld [vmem:[#allocation8 + $0x8] sm:$0xff] }
  0x30   :  { %316 = vmatpush3.msra.mxu0 %v76_v6  ;;  %351 = vmatpush3.msra.mxu1 %v172_v12  ;;  %v161_v33 = vld [vmem:[#allocation8] sm:$0xff]  ;;  %v271_v34 = vld [vmem:[%s563_s2] ss:$0 sm:$0xff] }
  0x31   :  { %317 = vmatprep.subr.mxu0 %v476_v0  ;;  %352 = vmatprep.subr.mxu1 %v476_v0  ;;  %v272_v39 = vld [vmem:[%s565_s4] ss:$0 sm:$0xff] }
  0x32   :  { %318 = vmatpush3.msra.mxu0 %v75_v9  ;;  %353 = vmatpush3.msra.mxu1 %v171_v14 }
  0x33   :  { %319 = vmatprep.subr.mxu0 %v476_v0  ;;  %354 = vmatprep.subr.mxu1 %v476_v0 }
  0x34   :  { %320 = vmatpush3.msra.mxu0 %v74_v11  ;;  %355 = vmatpush3.msra.mxu1 %v170_v16 }
  0x35   :  { %321 = vmatprep.subr.mxu0 %v476_v0  ;;  %356 = vmatprep.subr.mxu1 %v476_v0 }
  0x36   :  { %322 = vmatpush3.msra.mxu0 %v73_v13  ;;  %357 = vmatpush3.msra.mxu1 %v169_v18 }
  0x37   :  { %323 = vmatprep.subr.mxu0 %v476_v0  ;;  %358 = vmatprep.subr.mxu1 %v476_v0 }
  0x38   :  { %324 = vmatpush3.msra.mxu0 %v72_v15  ;;  %359 = vmatpush3.msra.mxu1 %v168_v20 }
  0x39   :  { %325 = vmatprep.subr.mxu0 %v476_v0  ;;  %360 = vmatprep.subr.mxu1 %v476_v0 }
  0x3a   :  { %326 = vmatpush3.msra.mxu0 %v71_v17  ;;  %361 = vmatpush3.msra.mxu1 %v167_v22 }
  0x3b   :  { %327 = vmatprep.subr.mxu0 %v476_v0  ;;  %362 = vmatprep.subr.mxu1 %v476_v0 }
  0x3c   :  { %328 = vmatpush3.msra.mxu0 %v70_v19  ;;  %363 = vmatpush3.msra.mxu1 %v166_v24 }
  0x3d   :  { %329 = vmatprep.subr.mxu0 %v476_v0  ;;  %364 = vmatprep.subr.mxu1 %v476_v0 }
  0x3e   :  { %330 = vmatpush3.msra.mxu0 %v69_v21  ;;  %365 = vmatpush3.msra.mxu1 %v165_v26 }
  0x3f   :  { %331 = vmatprep.subr.mxu0 %v476_v0  ;;  %366 = vmatprep.subr.mxu1 %v476_v0 }
  0x40   :  { %332 = vmatpush3.msra.mxu0 %v68_v23  ;;  %367 = vmatpush3.msra.mxu1 %v164_v28 }
  0x41   :  { %333 = vmatprep.subr.mxu0 %v476_v0  ;;  %368 = vmatprep.subr.mxu1 %v476_v0 }
  0x42   :  { %334 = vmatpush3.msra.mxu0 %v67_v25  ;;  %369 = vmatpush3.msra.mxu1 %v163_v31 }
  0x43   :  { %335 = vmatprep.subr.mxu0 %v476_v0  ;;  %370 = vmatprep.subr.mxu1 %v476_v0 }
  0x44   :  { %336 = vmatpush3.msra.mxu0 %v66_v27  ;;  %371 = vmatpush3.msra.mxu1 %v162_v32 }
  0x45   :  { %337 = vmatprep.subr.mxu0 %v476_v0  ;;  %372 = vmatprep.subr.mxu1 %v476_v0 }
  0x46   :  { %338 = vmatpush3.msra.mxu0 %v65_v29  ;;  %373 = vmatpush3.msra.mxu1 %v161_v33 }
  0x47   :  { %340 = vmatmul.mubr.f32.vlgmr.msra.gmra.mxu0 %v64_v30 }
 0x107   :  { %v154_v35 = vpop.f32.mrf.mxu0 }
 0x108   :  { %v155_v36 = vadd.f32 %v271_v34, %v154_v35 }
 0x109   :  { %v341_v37 = vpop.f32.mrf.mxu0 }
 0x10a   :  { %v158_v38 = vmax.f32 %v155_v36, 0.0 }
 0x10c   :  { %375 = vmatmul.mubr.f32.vlgmr.msra.gmra.mxu1 %v158_v38 }
 0x1cc   :  { %v250_v40 = vpop.f32.mrf.mxu1 }
 0x1cd   :  { %v251_v41 = vadd.f32 %v272_v39, %v250_v40 }
 0x1ce   :  { %v376_v42 = vpop.f32.mrf.mxu1 }
 0x1cf   :  { %254 = vst [vmem:[#allocation9] sm:$0xff] %v251_v41 }
 0x1d0   :  { %456 = shalt.err (!%p453_p5)
}
 0x1d1   :  { %264 = dma.vmem_to_hbm [thread:$0]  %s262_s12, 128, %s566_s5, [#allocation5]  }
 0x1d2   :  { %469 = dma.done.wait [#allocation5], 128  }
 0x1d3   :  { %470 = vsyncadd [#allocation5], 4294967168 }
 0x1d4   :  { %268 = vsyncpa [#allocation4], 1 }
 0x1d5   :  { %269 = vsyncpa [#allocation7], 1 }
 0x1d6   :  { %270 = vsyncpa [#allocation5], 1 }

</bundles_post_ra>
